<compile_context>
chip_gen: v7x
topology: tpu7x:2x2x1
jax: 0.10.0
libtpu: 0.0.40
codegen_flags: <defaults>
</compile_context>

<pallas_src>
import functools

import jax
import jax.numpy as jnp
from jax.experimental import pallas as pl
from jax.experimental.pallas import tpu as pltpu


def _selfloss_kernel(pred_ref, gold_ref, local_ref, colsum_ref, out_ref,
                     acc_e_ref, acc_d_ref, *,
                     tb, tiles_per_core, b_true, inv_bc, inv_m, mask_rows):
    c = pl.program_id(0)          # core-split axis ("parallel")
    i = pl.program_id(1)          # reduction axis  ("arbitrary")

    @pl.when(i == 0)
    def _init():
        acc_e_ref[...] = jnp.zeros_like(acc_e_ref)
        acc_d_ref[...] = jnp.zeros_like(acc_d_ref)

    # Cast after the load: HBM traffic stays at the caller's dtype (bf16-friendly).
    x = pred_ref[...].astype(jnp.float32)       # (tb, C)
    y = gold_ref[...].astype(jnp.float32)       # (tb, C)
    loc = local_ref[...].astype(jnp.float32)    # (tb, C)

    # Resident column-sum vector: slice the rows belonging to this tile.
    row0 = pl.multiple_of((c * tiles_per_core + i) * tb, 8)
    cs = colsum_ref[pl.ds(row0, tb), :].astype(jnp.float32)   # (tb, 1)

    # ---- loss1 per-element term (simplified multilabel soft margin):
    #   y*log_sigmoid(x) + (1-y)*log_sigmoid(-x) == y*x + log_sigmoid(-x)
    #   log_sigmoid(-x) == -(max(x,0) + log1p(exp(-|x|)))
    per_elem = y * x - jnp.maximum(x, 0.0) - jnp.log1p(jnp.exp(-jnp.abs(x)))
    if mask_rows:
        rows = row0 + jax.lax.broadcasted_iota(jnp.int32, (tb, 1), 0)
        per_elem = jnp.where(rows < b_true, per_elem, 0.0)

    # Axis-0 (sublane) fold into the persistent (1, C) accumulator:
    # cross-vreg VALU adds + a single tiny intra-vreg reduce.  The expensive
    # lane reduce over C is deferred to the finalize step (one time).
    acc_e_ref[...] += jnp.sum(per_elem, axis=0, keepdims=True)          # (1, C)

    # ---- per-row pairwise L2 distance (eps added to the difference, torch semantics)
    diff = loc - x + 1e-6
    dist = jnp.sqrt(jnp.sum(diff * diff, axis=-1, keepdims=True))       # (tb, 1)

    # ---- loss2 partial: sum_j colsum[j] * dist[j]   (padded rows have colsum==0)
    acc_d_ref[...] += jnp.sum(cs * dist, axis=0, keepdims=True)         # (1, 1)

    @pl.when(i == pl.num_programs(1) - 1)
    def _finalize():
        l1 = -jnp.sum(acc_e_ref[...], axis=-1, keepdims=True) * inv_bc  # (1, 1)
        total = l1 + acc_d_ref[...] * inv_m                             # (1, 1)
        # Lane-dense per-core output block; wrapper reads [c, 0, 0].
        out_ref[...] = jnp.broadcast_to(total[None], (1, 8, 128))


def _vmem_limit_bytes():
    """Generation-aware scoped-VMEM request (~0.7x physical, clamped)."""
    try:
        phys = pltpu.get_tpu_info().vmem_capacity_bytes
    except Exception:
        phys = 64 * 1024 * 1024          # conservative default = v7x per-TC VMEM
    return max(32 * 1024 * 1024, min(int(phys * 0.7), 96 * 1024 * 1024))


def _pick_row_tile(per_core_rows, C, itemsize, budget):
    """Largest sublane-aligned row tile whose working set fits the budget."""
    gran = max(8, 32 // itemsize)        # sublane packing: 8 f32 / 16 bf16 / 32 int8
    # 3 HBM streams x 2 pipeline buffers (input dtype) + ~6 f32 temporaries / element.
    per_row = (3 * 2 * itemsize + 6 * 4) * C
    tb_max = max(gran, (budget // per_row) // gran * gran)
    tb_need = -(-per_core_rows // gran) * gran
    return min(tb_max, tb_need)


def self_loss(predict, gold, local, mention_entity, *, n_core_split=2):
    """Returns scalar loss = loss1 + loss2 (float32)."""
    B, C = predict.shape
    m_rows, n_cols = mention_entity.shape
    if n_cols != B:
        raise ValueError(
            f"mention_entity has {n_cols} columns but predict has {B} rows")

    # Keep the three streamed arrays in one dtype (gold is 0/1 -> exact cast).
    gold = gold.astype(predict.dtype)
    local = local.astype(predict.dtype)

    # Hoist the m x n reduction out of the kernel:
    #   loss2 = sum_ij trunc(me)_ij * dist_j / m == sum_j colsum_j * dist_j / m
    colsum = jnp.sum(jnp.trunc(mention_entity).astype(jnp.float32),
                     axis=0).reshape(B, 1)

    itemsize = jnp.dtype(predict.dtype).itemsize
    vmem_limit = _vmem_limit_bytes()
    budget = int(vmem_limit * 0.75)

    per_core_rows = -(-B // n_core_split)
    tb = _pick_row_tile(per_core_rows, C, itemsize, budget)
    tiles_per_core = -(-per_core_rows // tb)
    b_pad = n_core_split * tiles_per_core * tb

    if b_pad != B:
        pad = b_pad - B
        predict = jnp.pad(predict, ((0, pad), (0, 0)))
        gold = jnp.pad(gold, ((0, pad), (0, 0)))
        local = jnp.pad(local, ((0, pad), (0, 0)))
        colsum = jnp.pad(colsum, ((0, pad), (0, 0)))   # zero colsum => no loss2 leak

    kernel = functools.partial(
        _selfloss_kernel,
        tb=tb,
        tiles_per_core=tiles_per_core,
        b_true=B,
        inv_bc=1.0 / float(B * C),
        inv_m=1.0 / float(m_rows),
        mask_rows=(b_pad != B),
    )

    stream_map = lambda c, i: (c * tiles_per_core + i, 0)

    out = pl.pallas_call(
        kernel,
        out_shape=jax.ShapeDtypeStruct((n_core_split, 8, 128), jnp.float32),
        grid_spec=pltpu.PrefetchScalarGridSpec(
            num_scalar_prefetch=0,
            grid=(n_core_split, tiles_per_core),
            in_specs=[
                pl.BlockSpec((tb, C), stream_map),          # predict
                pl.BlockSpec((tb, C), stream_map),          # gold
                pl.BlockSpec((tb, C), stream_map),          # local
                pl.BlockSpec((b_pad, 1), lambda c, i: (0, 0)),  # colsum (resident)
            ],
            out_specs=pl.BlockSpec((1, 8, 128), lambda c, i: (c, 0, 0)),
            scratch_shapes=[
                pltpu.VMEM((1, C), jnp.float32),   # loss1 accumulator
                pltpu.VMEM((1, 1), jnp.float32),   # loss2 accumulator
            ],
        ),
        compiler_params=pltpu.CompilerParams(
            dimension_semantics=("parallel", "arbitrary"),
            vmem_limit_bytes=vmem_limit,
        ),
        cost_estimate=pl.CostEstimate(
            flops=12 * b_pad * C,
            transcendentals=2 * b_pad * C + b_pad,
            bytes_accessed=3 * b_pad * C * itemsize + 4 * b_pad
                           + n_core_split * 8 * 128 * 4,
        ),
    )(predict, gold, local, colsum)

    return jnp.sum(out[:, 0, 0])


def self_loss_ref(predict, gold, local, mention_entity):
    """Pure-JAX reference (mirrors the PyTorch module)."""
    x = predict.astype(jnp.float32)
    y = gold.astype(jnp.float32)
    per_elem = y * jax.nn.log_sigmoid(x) + (1.0 - y) * jax.nn.log_sigmoid(-x)
    loss1 = jnp.mean(-jnp.mean(per_elem, axis=-1))
    diff = local.astype(jnp.float32) - x + 1e-6
    dist = jnp.sqrt(jnp.sum(diff * diff, axis=-1))            # (B,)
    me = jnp.trunc(mention_entity).astype(jnp.float32)        # (m, n)
    loss2 = jnp.sum(me * dist[None, :]) / me.shape[0]
    return loss1 + loss2


if __name__ == "__main__":
    key = jax.random.PRNGKey(0)
    B, C = 8, 32          # n == B candidates, C-dim scores/embeddings
    m, n = 4, B           # mention_entity incidence matrix (m mentions, n cands)

    k1, k2, k3, k4 = jax.random.split(key, 4)
    predict = jax.random.normal(k1, (B, C), dtype=jnp.float32)
    gold = (jax.random.uniform(k2, (B, C)) > 0.5).astype(jnp.float32)
    local = jax.random.normal(k3, (B, C), dtype=jnp.float32)
    mention_entity = (jax.random.uniform(k4, (m, n)) > 0.5).astype(jnp.float32)

    # f32 path (exact semantics of the PyTorch module).
    out = jax.block_until_ready(self_loss(predict, gold, local, mention_entity))
    ref = self_loss_ref(predict, gold, local, mention_entity)
    assert jnp.allclose(out, ref, atol=1e-5, rtol=1e-5), (out, ref)

    # bf16 HBM-stream path (perf mode): same kernel, half the DMA bytes; compare
    # against the reference evaluated on the same bf16-rounded inputs.
    p16 = predict.astype(jnp.bfloat16)
    g16 = gold.astype(jnp.bfloat16)
    l16 = local.astype(jnp.bfloat16)
    out16 = jax.block_until_ready(self_loss(p16, g16, l16, mention_entity))
    ref16 = self_loss_ref(p16, g16, l16, mention_entity)
    assert jnp.allclose(out16, ref16, atol=1e-3, rtol=1e-3), (out16, ref16)

    print("KERNEL_OK")
</pallas_src>

<mosaic_0001>
module attributes {stable_mosaic.version = 11 : i64} {
  func.func @_selfloss_kernel(%arg0: i32, %arg1: i32, %arg2: memref<8x32xf32, #tpu.memory_space<vmem>>, %arg3: memref<8x32xf32, #tpu.memory_space<vmem>>, %arg4: memref<8x32xf32, #tpu.memory_space<vmem>>, %arg5: memref<16x1xf32, #tpu.memory_space<vmem>>, %arg6: memref<1x8x128xf32, #tpu.memory_space<vmem>>, %arg7: memref<1x32xf32, #tpu.memory_space<vmem>>, %arg8: memref<1x1xf32, #tpu.memory_space<vmem>>) attributes {dimension_semantics = [#tpu.dimension_semantics<parallel>, #tpu.dimension_semantics<arbitrary>], iteration_bounds = array<i64: 2, 1>, scalar_prefetch = 0 : i64, scratch_operands = 2 : i64, tpu.core_type = #tpu.core_type<tc>, window_params = [{transform_indices = @transform_0, window_bounds = array<i64: 8, 32>}, {transform_indices = @transform_1, window_bounds = array<i64: 8, 32>}, {transform_indices = @transform_2, window_bounds = array<i64: 8, 32>}, {pipeline_mode = #tpu.pipeline_mode<synchronous>, transform_indices = @transform_3, window_bounds = array<i64: 16, 1>}, {transform_indices = @transform_4, window_bounds = array<i64: 1, 8, 128>}]} {
    %c0_i32 = arith.constant 0 : i32
    %0 = arith.cmpi eq, %arg1, %c0_i32 : i32
    %1 = arith.extui %0 : i1 to i32
    %c0_i32_0 = arith.constant 0 : i32
    %2 = arith.cmpi ne, %1, %c0_i32_0 : i32
    scf.if %2 {
      %cst_24 = arith.constant 0.000000e+00 : f32
      %52 = vector.broadcast %cst_24 : f32 to vector<1x32xf32>
      %c0_25 = arith.constant 0 : index
      %c0_26 = arith.constant 0 : index
      %53 = vector.load %arg7[%c0_25, %c0_26] : memref<1x32xf32, #tpu.memory_space<vmem>>, vector<1x32xf32>
      tpu.vector_store %arg7[%c0_25, %c0_26], %52 {strides = array<i32>} : memref<1x32xf32, #tpu.memory_space<vmem>>, vector<1x32xf32>,
      %cst_27 = arith.constant 0.000000e+00 : f32
      %54 = vector.broadcast %cst_27 : f32 to vector<1x1xf32>
      %c0_28 = arith.constant 0 : index
      %c0_29 = arith.constant 0 : index
      %55 = vector.load %arg8[%c0_28, %c0_29] : memref<1x1xf32, #tpu.memory_space<vmem>>, vector<1x1xf32>
      tpu.vector_store %arg8[%c0_28, %c0_29], %54 {strides = array<i32>} : memref<1x1xf32, #tpu.memory_space<vmem>>, vector<1x1xf32>,
    } else {
    }
    %c0 = arith.constant 0 : index
    %c0_1 = arith.constant 0 : index
    %3 = vector.load %arg2[%c0, %c0_1] : memref<8x32xf32, #tpu.memory_space<vmem>>, vector<8x32xf32>
    %c0_2 = arith.constant 0 : index
    %c0_3 = arith.constant 0 : index
    %4 = vector.load %arg3[%c0_2, %c0_3] : memref<8x32xf32, #tpu.memory_space<vmem>>, vector<8x32xf32>
    %c0_4 = arith.constant 0 : index
    %c0_5 = arith.constant 0 : index
    %5 = vector.load %arg4[%c0_4, %c0_5] : memref<8x32xf32, #tpu.memory_space<vmem>>, vector<8x32xf32>
    %c1_i32 = arith.constant 1 : i32
    %6 = arith.muli %arg0, %c1_i32 : i32
    %7 = arith.addi %6, %arg1 : i32
    %c8_i32 = arith.constant 8 : i32
    %8 = arith.muli %7, %c8_i32 : i32
    %9 = tpu.assume_multiple %8, 8 : i32
    %10 = arith.index_cast %9 : i32 to index
    %c0_6 = arith.constant 0 : index
    %11 = vector.load %arg5[%10, %c0_6] : memref<16x1xf32, #tpu.memory_space<vmem>>, vector<8x1xf32>
    %12 = arith.mulf %4, %3 : vector<8x32xf32>
    %cst = arith.constant 0.000000e+00 : f32
    %13 = vector.broadcast %cst : f32 to vector<8x32xf32>
    %14 = arith.maximumf %3, %13 : vector<8x32xf32>
    %15 = arith.subf %12, %14 : vector<8x32xf32>
    %16 = math.absf %3 : vector<8x32xf32>
    %cst_7 = arith.constant 0.000000e+00 : f32
    %17 = vector.broadcast %cst_7 : f32 to vector<8x32xf32>
    %18 = arith.subf %17, %16 : vector<8x32xf32>
    %19 = math.exp %18 : vector<8x32xf32>
    %20 = math.log1p %19 : vector<8x32xf32>
    %21 = arith.subf %15, %20 : vector<8x32xf32>
    %22 = tpu.iota {dimensions = array<i32: 0>} : vector<8x1xi32>
    %23 = vector.broadcast %9 : i32 to vector<8x1xi32>
    %24 = arith.addi %23, %22 : vector<8x1xi32>
    %c8_i32_8 = arith.constant 8 : i32
    %25 = vector.broadcast %c8_i32_8 : i32 to vector<8x1xi32>
    %26 = arith.cmpi slt, %24, %25 : vector<8x1xi32>
    %cst_9 = arith.constant 0.000000e+00 : f32
    %27 = vector.shape_cast %26 : vector<8x1xi1> to vector<8x1xi1>
    %28 = vector.broadcast %27 : vector<8x1xi1> to vector<8x32xi1>
    %29 = vector.broadcast %cst_9 : f32 to vector<8x32xf32>
    %30 = arith.select %28, %21, %29 : vector<8x32xi1>, vector<8x32xf32>
    %c0_10 = arith.constant 0 : index
    %c0_11 = arith.constant 0 : index
    %31 = vector.load %arg7[%c0_10, %c0_11] : memref<1x32xf32, #tpu.memory_space<vmem>>, vector<1x32xf32>
    %cst_12 = arith.constant dense<0.000000e+00> : vector<32xf32>
    %32 = vector.multi_reduction <add>, %30, %cst_12 [0] : vector<8x32xf32> to vector<32xf32>
    %33 = vector.shape_cast %32 : vector<32xf32> to vector<1x32xf32>
    %34 = arith.addf %31, %33 : vector<1x32xf32>
    %c0_13 = arith.constant 0 : index
    %c0_14 = arith.constant 0 : index
    %35 = vector.load %arg7[%c0_13, %c0_14] : memref<1x32xf32, #tpu.memory_space<vmem>>, vector<1x32xf32>
    tpu.vector_store %arg7[%c0_13, %c0_14], %34 {strides = array<i32>} : memref<1x32xf32, #tpu.memory_space<vmem>>, vector<1x32xf32>,
    %36 = arith.subf %5, %3 : vector<8x32xf32>
    %cst_15 = arith.constant 9.99999997E-7 : f32
    %37 = vector.broadcast %cst_15 : f32 to vector<8x32xf32>
    %38 = arith.addf %36, %37 : vector<8x32xf32>
    %39 = arith.mulf %38, %38 : vector<8x32xf32>
    %cst_16 = arith.constant dense<0.000000e+00> : vector<8xf32>
    %40 = vector.multi_reduction <add>, %39, %cst_16 [1] : vector<8x32xf32> to vector<8xf32>
    %41 = vector.shape_cast %40 : vector<8xf32> to vector<8x1xf32>
    %42 = math.sqrt %41 : vector<8x1xf32>
    %c0_17 = arith.constant 0 : index
    %c0_18 = arith.constant 0 : index
    %43 = vector.load %arg8[%c0_17, %c0_18] : memref<1x1xf32, #tpu.memory_space<vmem>>, vector<1x1xf32>
    %44 = arith.mulf %11, %42 : vector<8x1xf32>
    %cst_19 = arith.constant dense<0.000000e+00> : vector<1xf32>
    %45 = vector.multi_reduction <add>, %44, %cst_19 [0] : vector<8x1xf32> to vector<1xf32>
    %46 = vector.shape_cast %45 : vector<1xf32> to vector<1x1xf32>
    %47 = arith.addf %43, %46 : vector<1x1xf32>
    %c0_20 = arith.constant 0 : index
    %c0_21 = arith.constant 0 : index
    %48 = vector.load %arg8[%c0_20, %c0_21] : memref<1x1xf32, #tpu.memory_space<vmem>>, vector<1x1xf32>
    tpu.vector_store %arg8[%c0_20, %c0_21], %47 {strides = array<i32>} : memref<1x1xf32, #tpu.memory_space<vmem>>, vector<1x1xf32>,
    %c0_i32_22 = arith.constant 0 : i32
    %49 = arith.cmpi eq, %arg1, %c0_i32_22 : i32
    %50 = arith.extui %49 : i1 to i32
    %c0_i32_23 = arith.constant 0 : i32
    %51 = arith.cmpi ne, %50, %c0_i32_23 : i32
    scf.if %51 {
      %c0_24 = arith.constant 0 : index
      %c0_25 = arith.constant 0 : index
      %52 = vector.load %arg7[%c0_24, %c0_25] : memref<1x32xf32, #tpu.memory_space<vmem>>, vector<1x32xf32>
      %cst_26 = arith.constant dense<0.000000e+00> : vector<1xf32>
      %53 = vector.multi_reduction <add>, %52, %cst_26 [1] : vector<1x32xf32> to vector<1xf32>
      %54 = vector.shape_cast %53 : vector<1xf32> to vector<1x1xf32>
      %cst_27 = arith.constant 0.000000e+00 : f32
      %55 = vector.broadcast %cst_27 : f32 to vector<1x1xf32>
      %56 = arith.subf %55, %54 : vector<1x1xf32>
      %cst_28 = arith.constant 3.906250e-03 : f32
      %57 = vector.broadcast %cst_28 : f32 to vector<1x1xf32>
      %58 = arith.mulf %56, %57 : vector<1x1xf32>
      %c0_29 = arith.constant 0 : index
      %c0_30 = arith.constant 0 : index
      %59 = vector.load %arg8[%c0_29, %c0_30] : memref<1x1xf32, #tpu.memory_space<vmem>>, vector<1x1xf32>
      %cst_31 = arith.constant 2.500000e-01 : f32
      %60 = vector.broadcast %cst_31 : f32 to vector<1x1xf32>
      %61 = arith.mulf %59, %60 : vector<1x1xf32>
      %62 = arith.addf %58, %61 : vector<1x1xf32>
      %63 = vector.shape_cast %62 : vector<1x1xf32> to vector<1x1x1xf32>
      %64 = vector.shape_cast %63 : vector<1x1x1xf32> to vector<1x1x1xf32>
      %65 = vector.broadcast %64 : vector<1x1x1xf32> to vector<1x8x128xf32>
      %c0_32 = arith.constant 0 : index
      %c0_33 = arith.constant 0 : index
      %c0_34 = arith.constant 0 : index
      %66 = vector.load %arg6[%c0_32, %c0_33, %c0_34] : memref<1x8x128xf32, #tpu.memory_space<vmem>>, vector<1x8x128xf32>
      tpu.vector_store %arg6[%c0_32, %c0_33, %c0_34], %65 {strides = array<i32>} : memref<1x8x128xf32, #tpu.memory_space<vmem>>, vector<1x8x128xf32>,
    } else {
    }
    return
  }
  func.func @transform_0(%arg0: i32, %arg1: i32) -> (i32, i32) {
    %c1_i32 = arith.constant 1 : i32
    %0 = arith.muli %arg0, %c1_i32 : i32
    %1 = arith.addi %0, %arg1 : i32
    %c0_i32 = arith.constant 0 : i32
    %c0_i32_0 = arith.constant 0 : i32
    return %1, %c0_i32 : i32, i32
  }
  func.func @transform_1(%arg0: i32, %arg1: i32) -> (i32, i32) {
    %c1_i32 = arith.constant 1 : i32
    %0 = arith.muli %arg0, %c1_i32 : i32
    %1 = arith.addi %0, %arg1 : i32
    %c0_i32 = arith.constant 0 : i32
    %c0_i32_0 = arith.constant 0 : i32
    return %1, %c0_i32 : i32, i32
  }
  func.func @transform_2(%arg0: i32, %arg1: i32) -> (i32, i32) {
    %c1_i32 = arith.constant 1 : i32
    %0 = arith.muli %arg0, %c1_i32 : i32
    %1 = arith.addi %0, %arg1 : i32
    %c0_i32 = arith.constant 0 : i32
    %c0_i32_0 = arith.constant 0 : i32
    return %1, %c0_i32 : i32, i32
  }
  func.func @transform_3(%arg0: i32, %arg1: i32) -> (i32, i32) {
    %c0_i32 = arith.constant 0 : i32
    %c0_i32_0 = arith.constant 0 : i32
    %c0_i32_1 = arith.constant 0 : i32
    return %c0_i32, %c0_i32_0 : i32, i32
  }
  func.func @transform_4(%arg0: i32, %arg1: i32) -> (i32, i32, i32) {
    %c0_i32 = arith.constant 0 : i32
    %c0_i32_0 = arith.constant 0 : i32
    %c0_i32_1 = arith.constant 0 : i32
    return %arg0, %c0_i32, %c0_i32_0 : i32, i32, i32
  }
}

</mosaic_0001>

<bundles_post_ra>
// kernel: tpu_custom_call.1
= control target key start
LH: loop header
LB: loop body
LE: loop exit
PB: predicated region body
PF: predicated region fallthrough
CT: control target
= control target key end

     0   :  { %9 = vsyncpa [#allocation5], 0  ;;  %s1039_s0 = inlined_call_operand.vmem [shape: f32[16,32], index: 0, kind: input, shape index: {}]   ;;  %s1040_s1 = inlined_call_operand.hbm [shape: f32[16,32], index: 1, kind: input, shape index: {}]   ;;  %s1041_s2 = inlined_call_operand.hbm [shape: f32[16,32], index: 2, kind: input, shape index: {}]   ;;  %s1042_s3 = inlined_call_operand.vmem [shape: f32[16,1], index: 3, kind: input, shape index: {}]   ;;  %s1043_s4 = inlined_call_operand.hbm [shape: f32[2,8,128], index: 4, kind: output, shape index: {}]  }
   0x1   :  { %11 = vsyncpa [#allocation5 + $0x1], 0 }
   0x2   :  { %12 = vsyncpa [#allocation8], 0 }
   0x3   :  { %14 = vsyncpa [#allocation8 + $0x1], 0 }
   0x4   :  { %15 = vsyncpa [#allocation6], 0 }
   0x5   :  { %17 = vsyncpa [#allocation6 + $0x1], 0  ;;  %s792_s15 = smov 0   ;;  %s794_s16 = smov 0  }
   0x6   :  { %s796_s17 = smov 0   ;;  %s798_s18 = smov 0  }
   0x7   :  { %s800_s19 = smov 0   ;;  %s802_s20 = smov 0  }
   0x8 LB: > { %s521_s21 = sadd.s32 4294967295, %s761_s20   ;;  %s522_s22 = sadd.s32 4294967294, %s761_s20   ;;  %s761_s20 = sphi %s802_s20, %s23_s20   ;;  %s757_s19 = sphi %s800_s19, %s1063_s19   ;;  %s753_s18 = sphi %s798_s18, %s1062_s18   ;;  %s749_s17 = sphi %s796_s17, %s1061_s17   ;;  %s745_s16 = sphi %s794_s16, %s1060_s16   ;;  %s741_s15 = sphi %s792_s15, %s1059_s15  }
   0x9   : > { %s35_s23 = sadd.s32 1, %s757_s19  ;;  %s72_s24 = sadd.s32 1, %s749_s17 }
   0xa   : > { %p37_p0 = scmp.ge.s32.totalorder %s35_s23, 2  ;;  %p79_p1 = scmp.ne.s32.totalorder %s749_s17, %s745_s16 }
   0xb   : > { %p80_p2 = scmp.eq.s32.totalorder %s761_s20, 0  ;;  %p85_p3 = scmp.ne.s32.totalorder %s745_s16, %s741_s15 }
   0xc   : > { %s1065_s23 = smov (%p37_p0, %s35_s23), 0  ;;  %p86_p5 = scmp.eq.s32.totalorder %s521_s21, 0 }
   0xd   : > { %p833_p4 = por %p80_p2, %p79_p1  ;;  %s69_s26 = ssub.s32 %s757_s19, %s1065_s23 }
   0xe   : > { %p158_p6 = scmp.eq.s32.totalorder %s521_s21, 1  ;;  %p70_p7 = scmp.eq.s32.totalorder %s69_s26, 0 }
   0xf   : > { %p839_p8 = por %p86_p5, %p85_p3  ;;  %p164_p10 = scmp.eq.s32.totalorder %s522_s22, 1 }
  0x10   : > { %p843_p9 = por %p158_p6, %p79_p1  ;;  %p558_p13 = scmp.lt.s32.totalorder %s761_s20, 2 }
  0x11   : > { %s1047_s27 = scalar_select %p839_p8, 1, 0 }
  0x12   : > { %s1048_s28 = scalar_select %p843_p9, 1, 0 }
  0x13   : > { %s848_s29 = scalar_select %p70_p7, %s749_s17, %s72_s24  }
  0x14   : > { %p850_p11 = por %p164_p10, %p85_p3  ;;  %s857_s5 = sand.u32 1, %s749_s17  }
  0x15   : > { %s525_s6 = sshll.u32 %s857_s5, 3  ;;  %s526_s7 = sshll.u32 %s757_s19, 7 }
  0x16   : > { %s1049_s30 = scalar_select %p850_p11, 1, 0 }
  0x17   : > { %s866_s10 = scalar_lea.hbm %s1040_s1, %s526_s7  ;;  %s200_s11 = scalar_lea.vmem [#allocation4], %s525_s6 }
  0x18   : > { %s208_s12 = sshll.u32 %s200_s11, 4  ;;  %p874_p0 = pnand %p558_p13, %p833_p4  ;;  %s870_s12 = int_to_ptr.vmem [resolvable:$true] %s208_s12 }
  0x19   : > { %s197_s14 = scalar_lea.sflag [#allocation5], %s857_s5  ;;  %s615_s21 = scalar_lea.hbm %s866_s10, 128 }
  0x1a   : > { %p616_p3 = scmp.ne.s32.totalorder %s866_s10, %s615_s21  ;;  %p617_p5 = pneg %p874_p0 }
  0x1b   : > { %s620_s25 = scalar_lea.hbm %s1040_s1, 256  ;;  %p621_p4 = scmp.lt.u32.totalorder %s866_s10, %s1040_s1 }
  0x1c   : > { %p618_p6 = pnand %p617_p5, %p616_p3  ;;  %p622_p10 = scmp.lt.u32.totalorder %s620_s25, %s615_s21 }
  0x1d   : > { %p624_p12 = scmp.lt.u32.totalorder %s615_s21, %s866_s10 }
  0x1e   : > { %p619_p7 = pneg %p618_p6  ;;  %p623_p13 = por %p622_p10, %p621_p4 }
  0x20   : > { %p625_p1 = por %p624_p12, %p623_p13 }
  0x22   : > { %p626_p2 = pnand %p625_p1, %p619_p7 }
  0x24   : > { %629 = shalt.err (!%p626_p2)
}
  0x25   : > { %s630_s9 = scalar_lea.vmem %s870_s12, 128  ;;  %s763_s11 = smov [#allocation4]  }
  0x26   : > { %p631_p3 = scmp.ne.s32.totalorder %s870_s12, %s630_s9  ;;  %s635_s22 = sshll.u32 %s763_s11, 4  ;;  %s636_s22 = int_to_ptr.vmem [resolvable:$false] %s635_s22 }
  0x27   : > { %s637_s24 = scalar_lea.vmem %s636_s22, 256  ;;  %p638_p9 = scmp.lt.s32.totalorder %s870_s12, %s636_s22 }
  0x28   : > { %p633_p6 = pnand %p631_p3, %p617_p5  ;;  %p639_p4 = scmp.lt.s32.totalorder %s637_s24, %s630_s9 }
  0x2a   : > { %p634_p11 = pneg %p633_p6  ;;  %p640_p10 = por %p639_p4, %p638_p9 }
  0x2c   : > { %p641_p12 = pnand %p640_p10, %p634_p11 }
  0x2e   : > { %644 = shalt.err (!%p641_p12)
}
  0x2f   : > { %550 = dma.hbm_to_vmem [thread:$0]  (!%p874_p0), %s866_s10, 128, %s870_s12, %s197_s14  }
  0x30   : > { %p1051_p1 = scmp.lt.s32.totalorder %s761_s20, 3  ;;  %p1052_p2 = scmp.ge.s32.totalorder %s761_s20, 1 }
  0x31   : > { %s919_s8 = scalar_lea.hbm %s1041_s2, %s526_s7  ;;  %s219_s9 = scalar_lea.vmem [#allocation7], %s525_s6 }
  0x32   : > { %p910_p7 = pnand %p1052_p2, %p1051_p1  ;;  %s227_s11 = sshll.u32 %s219_s9, 4  ;;  %s228_s11 = int_to_ptr.vmem [resolvable:$true] %s227_s11 }
  0x33   : > { %s216_s10 = scalar_lea.sflag [#allocation8], %s857_s5  ;;  %s645_s12 = scalar_lea.hbm %s919_s8, 128 }
  0x34   : > { %s1053_s21 = scalar_select %p910_p7, 1, 0 }
  0x35   : > { %p646_p9 = scmp.ne.s32.totalorder %s919_s8, %s645_s12  ;;  %s650_s7 = scalar_lea.hbm %s1041_s2, 256 }
  0x36   : > { %p651_p3 = scmp.lt.u32.totalorder %s919_s8, %s1041_s2  ;;  %p652_p6 = scmp.lt.u32.totalorder %s650_s7, %s645_s12 }
  0x37   : > { %p648_p11 = pnand %p646_p9, %p617_p5  ;;  %p654_p10 = scmp.lt.u32.totalorder %s645_s12, %s919_s8 }
  0x38   : > { %p653_p4 = por %p652_p6, %p651_p3 }
  0x39   : > { %p649_p13 = pneg %p648_p11 }
  0x3a   : > { %p655_p12 = por %p654_p10, %p653_p4 }
  0x3c   : > { %p656_p1 = pnand %p655_p12, %p649_p13 }
  0x3e   : > { %659 = shalt.err (!%p656_p1)
}
  0x3f   : > { %s660_s5 = scalar_lea.vmem %s228_s11, 128  ;;  %s764_s6 = smov [#allocation7]  }
  0x40   : > { %p661_p2 = scmp.ne.s32.totalorder %s228_s11, %s660_s5  ;;  %s665_s26 = sshll.u32 %s764_s6, 4  ;;  %s666_s26 = int_to_ptr.vmem [resolvable:$false] %s665_s26 }
  0x41   : > { %s667_s9 = scalar_lea.vmem %s666_s26, 256  ;;  %p668_p8 = scmp.lt.s32.totalorder %s228_s11, %s666_s26 }
  0x42   : > { %p663_p9 = pnand %p661_p2, %p617_p5  ;;  %p669_p7 = scmp.lt.s32.totalorder %s667_s9, %s660_s5 }
  0x44   : > { %p664_p11 = pneg %p663_p9  ;;  %p670_p3 = por %p669_p7, %p668_p8 }
  0x46   : > { %p671_p6 = pnand %p670_p3, %p664_p11 }
  0x48   : > { %674 = shalt.err (!%p671_p6)
}
  0x49   : > { %553 = dma.hbm_to_vmem [thread:$0]  (!%p874_p0), %s919_s8, 128, %s228_s11, %s216_s10  }
  0x4a   : > { %p1054_p13 = scmp.ne.s32.totalorder %s1053_s21, 0 }
  0x4b   : > { %s946_s12 = sand.u32 (!%p1054_p13), 1, %s745_s16   ;;  %p1055_p8 = scmp.ne.s32.totalorder (!%p1054_p13), %s1047_s27, 0 }
  0x4c   : > { %236 = sbr.rel (%p1054_p13) target bundleno = 366 (0x16e), region = 36  ;;  %s949_s14 = sshll.u32 (!%p1054_p13), %s946_s12, 3 }
  0x4d   : > { %s239_s22 = scalar_lea.sflag (!%p1054_p13), [#allocation5], %s946_s12  ;;  %s242_s7 = scalar_lea.vmem (!%p1054_p13), [#allocation4], %s949_s14 }
  0x53   : > { %728 = dma.done.wait (%p1055_p8), %s239_s22, 128  }
  0x54   : > { %730 = vsyncadd (%p1055_p8), %s239_s22, 4294967168  ;;  %s248_s13 = scalar_lea.sflag [#allocation8], %s946_s12  ;;  %s251_s21 = scalar_lea.vmem [#allocation7], %s949_s14 }
  0x55   : > { %732 = dma.done.wait (%p1055_p8), %s248_s13, 128  }
  0x56   : > { %734 = vsyncadd (%p1055_p8), %s248_s13, 4294967168  ;;  %p287_p0 = scmp.lt.s32.totalorder %s753_s18, 1  ;;  %vm298_vm0 = vcmask 253952   ;;  %v765_v0 = vmov 0.0   ;;  %vm300_vm1 = vcmask 0   ;;  %v304_v2 = vld [vmem:[%s251_s21] sm:$0xff]  ;;  %v326_v12 = vlaneseq }
  0x57   : > { %299 = vst.msk [vmem:[#allocation2] sm:$0x1] %vm298_vm0, %v765_v0  ;;  %vm335_vm2 = vcmask 261120   ;;  %v303_v14 = vld [vmem:[%s242_s7] sm:$0xff]  ;;  %s534_s27 = sshll.u32 %s753_s18, 3  ;;  %vm361_vm7 = vcmask 7168  }
  0x58   : > { %s288_s8 = scalar_select %p287_p0, %s753_s18, 1  ;;  %301 = vst.msk [vmem:[#allocation3] sm:$0x1] %vm300_vm1, %v765_v0  ;;  %v327_v15 = vshrl.u32 %v326_v12, 7  ;;  %v328_v17 = vstv %s534_s27 }
  0x59   : > { %s307_s26 = scalar_lea.vmem %s1042_s3, %s534_s27  ;;  %s285_s9 = scalar_lea.vmem [#allocation9], %s949_s14 }
  0x5a   : > { %s533_s11 = sshll.u32 %s288_s8, 3  ;;  %v329_v21 = vadd.s32 %v328_v17, %v327_v15  ;;  %v308_v44 = vld [vmem:[%s307_s26] sm:$0xff]  ;;  %s403_s22 = sshll.u32 %s285_s9, 4  ;;  %s987_s22 = int_to_ptr.vmem [resolvable:$true] %s403_s22 }
  0x5b   : > { %s290_s25 = scalar_lea.vmem %s1039_s0, %s533_s11  ;;  %s536_s7 = sshll.u32 %s753_s18, 7 }
  0x5c   : > { %v302_v1 = vld [vmem:[%s290_s25] sm:$0xff]  ;;  %vm330_vm4 = vcmp.lt.s32.totalorder %v329_v21, 8  ;;  %s992_s11 = scalar_lea.hbm %s1043_s4, %s536_s7  ;;  %s390_s10 = scalar_lea.sflag [#allocation6], %s946_s12 }
  0x5d   : > { %v346_v3 = vsub.f32 %v304_v2, %v302_v1  ;;  %v312_v4 = vand.u32 2147483647, %v302_v1  ;;  %v309_v18 = vmul.f32 %v303_v14, %v302_v1  ;;  %v310_v19 = vmax.f32 %v302_v1, 0.0  ;;  %s675_s24 = scalar_lea.vmem %s987_s22, 128  ;;  %p1056_p7 = scmp.ne.s32.totalorder %s1048_s28, 0 }
  0x5e   : > { %v334_v35 = vld [vmem:[#allocation2] sm:$0x1]  ;;  %p676_p5 = scmp.ne.s32.totalorder %s987_s22, %s675_s24  ;;  %s766_s18 = smov [#allocation9]  }
  0x5f   : > { %v347_v5 = vadd.f32 1e-06, %v346_v3  ;;  %v313_v6 = vsub.f32 0.0, %v312_v4  ;;  %v311_v24 = vsub.f32 %v309_v18, %v310_v19  ;;  %v359_v54 = vld [vmem:[#allocation3] sm:$0x1]  ;;  %s679_s14 = sshll.u32 %s766_s18, 4  ;;  %s680_s14 = int_to_ptr.vmem [resolvable:$false] %s679_s14 }
  0x60   : > { %p677_p4 = pnand %p676_p5, %p1056_p7  ;;  %s681_s25 = scalar_lea.vmem %s680_s14, 256 }
  0x61   : > { %v348_v7 = vmul.f32 %v347_v5, %v347_v5  ;;  %v314_v8 = vmul.f32 1.442695, %v313_v6  ;;  %p682_p12 = scmp.lt.s32.totalorder %s987_s22, %s680_s14  ;;  %p683_p1 = scmp.lt.s32.totalorder %s681_s25, %s675_s24 }
  0x62   : > { %p678_p10 = pneg %p677_p4 }
  0x63   : > { %v349_v9 = vsel %vm335_vm2, %v348_v7, 0.0  ;;  %609 = vpow2.f32 %v314_v8  ;;  %p684_p2 = por %p683_p1, %p682_p12 }
  0x64   : > { %350 = vadd.xlane.f32.xlu0 %v349_v9 }
  0x65   : > { %p685_p9 = pnand %p684_p2, %p678_p10 }
  0x6d   : > { %v610_v10 = vpop.eup %609 }
  0x6e   : > { %v316_v11 = vadd.f32 1.0, %v610_v10  ;;  %v319_v13 = vmul.f32 -0.5, %v610_v10  ;;  %v322_v20 = vand.u32 2147483647, %v610_v10 }
  0x70   : > { %611 = vlog2.f32 %v316_v11  ;;  %v320_v16 = vadd.f32 1.0, %v319_v13  ;;  %vm323_vm3 = vcmp.lt.f32.partialorder %v322_v20, 0.0004427343 }
  0x72   : > { %v321_v22 = vmul.f32 %v610_v10, %v320_v16 }
  0x7a   : > { %v612_v23 = vpop.eup %611 }
  0x7b   : > { %v318_v25 = vmul.f32 0.6931472, %v612_v23 }
  0x7d   : > { %v324_v26 = vsel %vm323_vm3, %v321_v22, %v318_v25 }
  0x7e   : > { %v325_v27 = vsub.f32 %v311_v24, %v324_v26 }
  0x80   : > { %v333_v28 = vsel %vm330_vm4, %v325_v27, 0.0 }
  0x81   : > { %v336_v29 = vsel %vm335_vm2, %v333_v28, 0.0 }
  0x82   : > { %v337_v30 = vrot.slane %v336_v29, 4 }
  0x84   : > { %v338_v31 = vadd.f32 %v337_v30, %v336_v29 }
  0x86   : > { %v339_v32 = vrot.slane %v338_v31, 2 }
  0x88   : > { %v340_v33 = vadd.f32 %v339_v32, %v338_v31 }
  0x8a   : > { %v341_v34 = vrot.slane %v340_v33, 1 }
  0x8c   : > { %v342_v36 = vadd.f32 %v341_v34, %v340_v33 }
  0x8e   : > { %v343_v37 = vadd.f32 %v342_v36, %v334_v35 }
  0x90   : > { %345 = vst.msk [vmem:[#allocation2] sm:$0x1] %vm298_vm0, %v343_v37 }
  0x97   : > { %v375_v38 = vld [vmem:[#allocation2] sm:$0x1] }
  0x98   : > { %v376_v39 = vsel %vm298_vm0, %v375_v38, 0.0 }
  0x99   : > { %377 = vadd.xlane.f32.xlu0 %v376_v39 }
  0xf1   : > { %v351_v40 = vpop.xlane.xlu0 %350 }
  0xf2   : > { %613 = vrsqrt.f32 %v351_v40  ;;  %vm354_vm5 = vcmp.eq.f32.partialorder %v351_v40, inf  ;;  %v357_v42 = vand.u32 2147483648, %v351_v40  ;;  %vm356_vm6 = vcmp.eq.f32.partialorder %v351_v40, 0.0 }
  0xfc   : > { %v614_v41 = vpop.eup %613 }
  0xfd   : > { %v353_v43 = vmul.f32 %v614_v41, %v351_v40 }
  0xff   : > { %v355_v45 = vsel %vm354_vm5, %v351_v40, %v353_v43 }
 0x100   : > { %v358_v46 = vsel %vm356_vm6, %v357_v42, %v355_v45 }
 0x101   : > { %v360_v47 = vmul.f32 %v358_v46, %v308_v44 }
 0x103   : > { %v362_v48 = vsel %vm361_vm7, %v360_v47, 0.0 }
 0x104   : > { %v363_v49 = vrot.slane %v362_v48, 4 }
 0x106   : > { %v364_v50 = vadd.f32 %v363_v49, %v362_v48 }
 0x108   : > { %v365_v51 = vrot.slane %v364_v50, 2 }
 0x10a   : > { %v366_v52 = vadd.f32 %v365_v51, %v364_v50 }
 0x10c   : > { %v367_v53 = vrot.slane %v366_v52, 1 }
 0x10e   : > { %v368_v55 = vadd.f32 %v367_v53, %v366_v52 }
 0x110   : > { %v369_v56 = vadd.f32 %v368_v55, %v359_v54 }
 0x112   : > { %371 = vst.msk [vmem:[#allocation3] sm:$0x1] %vm300_vm1, %v369_v56 }
 0x119   : > { %v381_v58 = vld [vmem:[#allocation3] sm:$0x1] }
 0x11a   : > { %v382_v61 = vmul.f32 0.25, %v381_v58 }
 0x126   : > { %v378_v57 = vpop.xlane.xlu0 %377 }
 0x127   : > { %v379_v59 = vsub.f32 0.0, %v378_v57 }
 0x129   : > { %v380_v60 = vmul.f32 0.00390625, %v379_v59 }
 0x12b   : > { %v383_v62 = vadd.f32 %v382_v61, %v380_v60 }
 0x12d   : > { %539 = vpush %v383_v62 }
 0x15e   : > { %s540_s13 = spop %539 }
 0x15f   : > { %v386_v63 = vstv %s540_s13 }
 0x160   : > { %388 = vst [vmem:[%s285_s9] sm:$0xff] %v386_v63 }
 0x161   : > { %688 = shalt.err (!%p685_p9)
}
 0x162   : > { %s689_s12 = scalar_lea.hbm %s992_s11, 128  ;;  %s693_s6 = scalar_lea.hbm %s1043_s4, 256 }
 0x163   : > { %p690_p11 = scmp.ne.s32.totalorder %s992_s11, %s689_s12  ;;  %p694_p13 = scmp.lt.u32.totalorder %s992_s11, %s1043_s4 }
 0x164   : > { %p695_p8 = scmp.lt.u32.totalorder %s693_s6, %s689_s12  ;;  %p697_p5 = scmp.lt.u32.totalorder %s689_s12, %s992_s11 }
 0x165   : > { %p691_p3 = pnand %p690_p11, %p1056_p7 }
 0x166   : > { %p696_p0 = por %p695_p8, %p694_p13 }
 0x167   : > { %p692_p6 = pneg %p691_p3 }
 0x168   : > { %p698_p4 = por %p697_p5, %p696_p0 }
 0x16a   : > { %p699_p10 = pnand %p698_p4, %p692_p6 }
 0x16c   : > { %702 = shalt.err (!%p699_p10)
}
 0x16d   : > { %545 = dma.vmem_to_hbm [thread:$0]  (%p1056_p7), %s987_s22, 128, %s992_s11, %s390_s10  }
 0x16e PF: > { %s415_s7 = sand.u32 1, %s741_s15   ;;  %p1057_p12 = scmp.ne.s32.totalorder %s1049_s30, 0 }
 0x16f   : > { %p1058_p1 = scmp.ge.s32.totalorder %s761_s20, 2  ;;  %s416_s13 = scalar_lea.sflag [#allocation6], %s415_s7 }
 0x171   : > { %p555_p2 = pnand %p1058_p1, %p1057_p12 }
 0x173   : > { %736 = dma.done.wait (!%p555_p2), %s416_s13, 128  }
 0x174   : > { %738 = vsyncadd (!%p555_p2), %s416_s13, 4294967168  ;;  %s23_s20 = sadd.s32 1, %s761_s20   ;;  %s1059_s15 = smov %s745_s16 }
 0x175   : > { %p20_p9 = scmp.ge.s32.totalorder %s23_s20, 4   ;;  %s1060_s16 = smov %s749_s17 }
 0x176   : > { %s1061_s17 = smov %s848_s29  ;;  %s1062_s18 = smov %s757_s19 }
 0x177   : > { %s1063_s19 = smov %s1065_s23  ;;  %22 = sbr.rel (!%p20_p9) target bundleno = 8 (0x8), region = 106 }
 0x17e   :  { %421 = vsyncpa [#allocation5], 1 }
 0x17f   :  { %423 = vsyncpa [#allocation5 + $0x1], 1 }
 0x180   :  { %424 = vsyncpa [#allocation8], 1 }
 0x181   :  { %426 = vsyncpa [#allocation8 + $0x1], 1 }
 0x182   :  { %427 = vsyncpa [#allocation6], 1 }
 0x183   :  { %429 = vsyncpa [#allocation6 + $0x1], 1 }

</bundles_post_ra>
